<compile_context>
chip_gen: v7x
topology: tpu7x:2x2x1
jax: 0.10.0
libtpu: 0.0.40
codegen_flags: <defaults>
</compile_context>

<pallas_src>
import functools

import jax
import jax.numpy as jnp
from jax import lax
from jax.experimental import pallas as pl
from jax.experimental.pallas import tpu as pltpu

_INV_SQRT2 = 0.7071067811865476      # 1/sqrt(2)
_INV_SQRT2PI = 0.3989422804014327    # 1/sqrt(2*pi)
_ERF_C1 = 1.1283791670955126         # 2/sqrt(pi)
_ERF_C3 = 2.0 * 0.044715 * _ERF_C1   # cubic coeff of the tanh-based erf approx

_LANE = 128
_TM_CAP = 2048                       # 2048*128*4 B = 1 MiB per block


def _flow1d_kernel(params_ref, x_ref, z_ref, ldz_ref, *, n_components,
                   approx_erf):
    """One (tm, 128) tile of x; packed mixture scalars (4, K) live in SMEM.

    params_ref rows: 0 -> mu_k, 1 -> a_k = 1/(sigma_k*sqrt(2)),
                     2 -> w_k/2, 3 -> c_k = w_k/(sigma_k*sqrt(2*pi)).
    """
    x = x_ref[...]                                      # (tm, 128) f32

    def _terms(k):
        u = (x - params_ref[0, k]) * params_ref[1, k]   # (x - mu)/(sigma*sqrt2)
        u2 = u * u                                      # shared: cubic + exp
        if approx_erf:
            # erf(u) ~= tanh((2/sqrt(pi))*u + c3*u^3): heavy op rides the EUP.
            erf_u = jnp.tanh(u * (_ERF_C1 + _ERF_C3 * u2))
        else:
            erf_u = lax.erf(u)                          # exact (VPU polynomial)
        z_t = params_ref[2, k] * erf_u                  # 0.5*w_k*erf(u)
        p_t = params_ref[3, k] * jnp.exp(-u2)           # w_k*pdf(x)
        return z_t, p_t

    # Peel k = 0 so the accumulators need no zero / 0.5 splat + extra adds.
    z_acc, pdf_acc = _terms(0)
    z_acc = z_acc + 0.5                                 # 0.5 * sum_k w_k == 0.5
    for k in range(1, n_components):                    # small & static: unroll
        z_t, p_t = _terms(k)
        z_acc = z_acc + z_t
        pdf_acc = pdf_acc + p_t

    z_ref[...] = z_acc
    # Matches the reference (and PyTorch) exactly: -inf when every component's
    # exp underflows; no log-sum-exp guard, by spec.
    ldz_ref[...] = jnp.log(pdf_acc)


def _choose_tm(rows):
    """Block row count.

    * rows < 512: a single block -- nothing worth overlapping, so skip the
      pipeline prologue and ~0.35 us/step overhead (v5e/v6e single-TC case).
    * rows >= 512: >= 4 blocks so v7x's two TensorCores each see >= 2 blocks
      (grid axis is "parallel") and each block's DMA hides behind the previous
      block's compute; capped at 1 MiB blocks for huge inputs.
    Static thresholds are used (safe on 1- and 2-TC parts alike) rather than a
    generation-dependent core-count query.
    """
    if rows <= 0:
        return 8
    if rows < 512:
        return max(8, ((rows + 7) // 8) * 8)
    quarter = -(-rows // 4)                  # ceil(rows/4) -> >= 4 blocks
    tm = ((quarter + 7) // 8) * 8            # sublane multiple
    return max(8, min(_TM_CAP, tm))


def flow1d_forward(x, mu_values, log_sigma, weight_logits, *, approx_erf=True):
    """JAX wrapper. x: any shape, float. Returns (z, log_dz_by_dx), each (N,).

    approx_erf=True (default): EUP tanh approximation of erf (max abs error in
    z ~4e-4).  approx_erf=False: exact lax.erf (bit-faithful to the module).
    """
    n_components = mu_values.shape[0]

    # Tiny K-length parameter glue stays in plain JAX: removes all in-kernel
    # divides / softmax; the kernel only sees folded per-component constants.
    weights = jax.nn.softmax(weight_logits.astype(jnp.float32))
    inv_sigma = jnp.exp(-log_sigma.astype(jnp.float32))
    mus = mu_values.astype(jnp.float32)
    a = inv_sigma * jnp.float32(_INV_SQRT2)                 # 1/(sigma*sqrt2)
    half_w = jnp.float32(0.5) * weights                     # w/2
    c = weights * inv_sigma * jnp.float32(_INV_SQRT2PI)     # w/(sigma*sqrt2pi)
    params = jnp.stack([mus, a, half_w, c], axis=0)         # (4, K) -> SMEM

    x_flat = x.reshape(-1).astype(jnp.float32)
    n = x_flat.shape[0]
    if n == 0:
        empty = jnp.zeros((0,), jnp.float32)
        return empty, empty

    # Lane-dense (rows, 128) slab. The pad (whole-array HBM copy) only happens
    # on the unaligned path; for lane-aligned N the reshape and the trailing
    # [:n] slices are no-ops.  For huge unaligned N this costs ~12 B/elem of
    # extra, un-hidden HBM traffic -- accepted because the function contract
    # is a flat (N,) result.
    n_pad = (-n) % _LANE
    if n_pad:
        x_flat = jnp.pad(x_flat, (0, n_pad))
    rows = x_flat.shape[0] // _LANE
    x2d = x_flat.reshape(rows, _LANE)

    tm = _choose_tm(rows)
    grid = (pl.cdiv(rows, tm),)          # ragged last block masked by Pallas

    smem_spec = pl.BlockSpec(memory_space=pltpu.MemorySpace.SMEM)
    tile_spec = pl.BlockSpec((tm, _LANE), lambda i: (i, 0))

    total = rows * _LANE
    per_comp_flops = 12 if approx_erf else 25
    cost = pl.CostEstimate(
        flops=int(total) * n_components * per_comp_flops,
        transcendentals=int(total) * (n_components * (2 if approx_erf else 1) + 1),
        bytes_accessed=int(total) * 4 * 3)               # 1 in + 2 out, f32

    z2d, ldz2d = pl.pallas_call(
        functools.partial(_flow1d_kernel, n_components=n_components,
                          approx_erf=approx_erf),
        out_shape=(jax.ShapeDtypeStruct((rows, _LANE), jnp.float32),
                   jax.ShapeDtypeStruct((rows, _LANE), jnp.float32)),
        grid_spec=pltpu.PrefetchScalarGridSpec(
            num_scalar_prefetch=0,
            grid=grid,
            in_specs=[smem_spec, tile_spec],
            out_specs=[tile_spec, tile_spec],
        ),
        compiler_params=pltpu.CompilerParams(
            dimension_semantics=("parallel",),
            vmem_limit_bytes=32 * 1024 * 1024),
        cost_estimate=cost,
    )(params, x2d)

    z = z2d.reshape(-1)[:n]
    log_dz_by_dx = ldz2d.reshape(-1)[:n]
    return z, log_dz_by_dx


def _reference(x, mu_values, log_sigma, weight_logits):
    """Pure-JAX reference matching the PyTorch module."""
    xf = x.reshape(-1, 1).astype(jnp.float32)
    w = jax.nn.softmax(weight_logits).reshape(1, -1)
    mu = mu_values.reshape(1, -1)
    sigma = jnp.exp(log_sigma).reshape(1, -1)
    t = (xf - mu) / sigma
    cdf = 0.5 * (1.0 + lax.erf(t * _INV_SQRT2))
    pdf = (_INV_SQRT2PI / sigma) * jnp.exp(-0.5 * t * t)
    z = (cdf * w).sum(axis=1)
    log_dz_by_dx = jnp.log((pdf * w).sum(axis=1))
    return z, log_dz_by_dx


if __name__ == "__main__":
    key = jax.random.PRNGKey(0)
    k_x, k_mu, k_x2 = jax.random.split(key, 3)

    n_components = 4
    # Deterministic parameter init (shapes from Flow1d.__init__).
    mu_values = jax.random.normal(k_mu, (n_components,), jnp.float32)
    log_sigma = jnp.zeros((n_components,), jnp.float32)
    weight_logits = jnp.ones((n_components,), jnp.float32)

    # Main small input; forward flattens it anyway: 2*4*16*16 = 2048 elements.
    x = jax.random.normal(k_x, (2, 4, 16, 16), jnp.float32)
    z_ref, ldz_ref = _reference(x, mu_values, log_sigma, weight_logits)

    # Fast (default) path: erf via the EUP tanh approximation.
    z, ldz = flow1d_forward(x, mu_values, log_sigma, weight_logits)
    jax.block_until_ready((z, ldz))
    assert z.shape == (x.size,) and ldz.shape == (x.size,)
    assert jnp.allclose(z, z_ref, atol=1e-3, rtol=1e-3)      # ~4e-4 approx bound
    assert jnp.allclose(ldz, ldz_ref, atol=1e-5, rtol=1e-5)  # pdf path is exact

    # Exact-erf path: tight tolerance against the reference.
    z_e, ldz_e = flow1d_forward(x, mu_values, log_sigma, weight_logits,
                                approx_erf=False)
    jax.block_until_ready((z_e, ldz_e))
    assert jnp.allclose(z_e, z_ref, atol=1e-5, rtol=1e-5)
    assert jnp.allclose(ldz_e, ldz_ref, atol=1e-5, rtol=1e-5)

    # Non-lane-aligned / ragged-block path (105 elements).
    x_odd = jax.random.normal(k_x2, (3, 5, 7), jnp.float32)
    z2, ldz2 = flow1d_forward(x_odd, mu_values, log_sigma, weight_logits)
    jax.block_until_ready((z2, ldz2))
    z2_ref, ldz2_ref = _reference(x_odd, mu_values, log_sigma, weight_logits)
    assert jnp.allclose(z2, z2_ref, atol=1e-3, rtol=1e-3)
    assert jnp.allclose(ldz2, ldz2_ref, atol=1e-5, rtol=1e-5)

    print("KERNEL_OK")
</pallas_src>

<mosaic_0001>
module attributes {stable_mosaic.version = 11 : i64} {
  func.func @_flow1d_kernel(%arg0: i32, %arg1: memref<4x4xf32, #tpu.memory_space<smem>>, %arg2: memref<16x128xf32, #tpu.memory_space<vmem>>, %arg3: memref<16x128xf32, #tpu.memory_space<vmem>>, %arg4: memref<16x128xf32, #tpu.memory_space<vmem>>) attributes {dimension_semantics = [#tpu.dimension_semantics<parallel>], iteration_bounds = array<i64: 1>, scalar_prefetch = 0 : i64, scratch_operands = 0 : i64, tpu.core_type = #tpu.core_type<tc>, window_params = [{transform_indices = @transform_0, window_bounds = array<i64: 4, 4>}, {transform_indices = @transform_1, window_bounds = array<i64: 16, 128>}, {transform_indices = @transform_2, window_bounds = array<i64: 16, 128>}, {transform_indices = @transform_3, window_bounds = array<i64: 16, 128>}]} {
    %c0 = arith.constant 0 : index
    %c0_0 = arith.constant 0 : index
    %0 = vector.load %arg2[%c0, %c0_0] : memref<16x128xf32, #tpu.memory_space<vmem>>, vector<16x128xf32>
    %c0_1 = arith.constant 0 : index
    %c0_2 = arith.constant 0 : index
    %1 = memref.load %arg1[%c0_1, %c0_2] : memref<4x4xf32, #tpu.memory_space<smem>>
    %2 = vector.broadcast %1 : f32 to vector<16x128xf32>
    %3 = arith.subf %0, %2 : vector<16x128xf32>
    %c1 = arith.constant 1 : index
    %c0_3 = arith.constant 0 : index
    %4 = memref.load %arg1[%c1, %c0_3] : memref<4x4xf32, #tpu.memory_space<smem>>
    %5 = vector.broadcast %4 : f32 to vector<16x128xf32>
    %6 = arith.mulf %3, %5 : vector<16x128xf32>
    %7 = arith.mulf %6, %6 : vector<16x128xf32>
    %cst = arith.constant 0.100910947 : f32
    %8 = vector.broadcast %cst : f32 to vector<16x128xf32>
    %9 = arith.mulf %8, %7 : vector<16x128xf32>
    %cst_4 = arith.constant 1.12837923 : f32
    %10 = vector.broadcast %cst_4 : f32 to vector<16x128xf32>
    %11 = arith.addf %10, %9 : vector<16x128xf32>
    %12 = arith.mulf %6, %11 : vector<16x128xf32>
    %13 = math.tanh %12 : vector<16x128xf32>
    %c2 = arith.constant 2 : index
    %c0_5 = arith.constant 0 : index
    %14 = memref.load %arg1[%c2, %c0_5] : memref<4x4xf32, #tpu.memory_space<smem>>
    %15 = vector.broadcast %14 : f32 to vector<16x128xf32>
    %16 = arith.mulf %15, %13 : vector<16x128xf32>
    %c3 = arith.constant 3 : index
    %c0_6 = arith.constant 0 : index
    %17 = memref.load %arg1[%c3, %c0_6] : memref<4x4xf32, #tpu.memory_space<smem>>
    %cst_7 = arith.constant 0.000000e+00 : f32
    %18 = vector.broadcast %cst_7 : f32 to vector<16x128xf32>
    %19 = arith.subf %18, %7 : vector<16x128xf32>
    %20 = math.exp %19 : vector<16x128xf32>
    %21 = vector.broadcast %17 : f32 to vector<16x128xf32>
    %22 = arith.mulf %21, %20 : vector<16x128xf32>
    %cst_8 = arith.constant 5.000000e-01 : f32
    %23 = vector.broadcast %cst_8 : f32 to vector<16x128xf32>
    %24 = arith.addf %16, %23 : vector<16x128xf32>
    %c0_9 = arith.constant 0 : index
    %c1_10 = arith.constant 1 : index
    %25 = memref.load %arg1[%c0_9, %c1_10] : memref<4x4xf32, #tpu.memory_space<smem>>
    %26 = vector.broadcast %25 : f32 to vector<16x128xf32>
    %27 = arith.subf %0, %26 : vector<16x128xf32>
    %c1_11 = arith.constant 1 : index
    %c1_12 = arith.constant 1 : index
    %28 = memref.load %arg1[%c1_11, %c1_12] : memref<4x4xf32, #tpu.memory_space<smem>>
    %29 = vector.broadcast %28 : f32 to vector<16x128xf32>
    %30 = arith.mulf %27, %29 : vector<16x128xf32>
    %31 = arith.mulf %30, %30 : vector<16x128xf32>
    %cst_13 = arith.constant 0.100910947 : f32
    %32 = vector.broadcast %cst_13 : f32 to vector<16x128xf32>
    %33 = arith.mulf %32, %31 : vector<16x128xf32>
    %cst_14 = arith.constant 1.12837923 : f32
    %34 = vector.broadcast %cst_14 : f32 to vector<16x128xf32>
    %35 = arith.addf %34, %33 : vector<16x128xf32>
    %36 = arith.mulf %30, %35 : vector<16x128xf32>
    %37 = math.tanh %36 : vector<16x128xf32>
    %c2_15 = arith.constant 2 : index
    %c1_16 = arith.constant 1 : index
    %38 = memref.load %arg1[%c2_15, %c1_16] : memref<4x4xf32, #tpu.memory_space<smem>>
    %39 = vector.broadcast %38 : f32 to vector<16x128xf32>
    %40 = arith.mulf %39, %37 : vector<16x128xf32>
    %c3_17 = arith.constant 3 : index
    %c1_18 = arith.constant 1 : index
    %41 = memref.load %arg1[%c3_17, %c1_18] : memref<4x4xf32, #tpu.memory_space<smem>>
    %cst_19 = arith.constant 0.000000e+00 : f32
    %42 = vector.broadcast %cst_19 : f32 to vector<16x128xf32>
    %43 = arith.subf %42, %31 : vector<16x128xf32>
    %44 = math.exp %43 : vector<16x128xf32>
    %45 = vector.broadcast %41 : f32 to vector<16x128xf32>
    %46 = arith.mulf %45, %44 : vector<16x128xf32>
    %47 = arith.addf %24, %40 : vector<16x128xf32>
    %48 = arith.addf %22, %46 : vector<16x128xf32>
    %c0_20 = arith.constant 0 : index
    %c2_21 = arith.constant 2 : index
    %49 = memref.load %arg1[%c0_20, %c2_21] : memref<4x4xf32, #tpu.memory_space<smem>>
    %50 = vector.broadcast %49 : f32 to vector<16x128xf32>
    %51 = arith.subf %0, %50 : vector<16x128xf32>
    %c1_22 = arith.constant 1 : index
    %c2_23 = arith.constant 2 : index
    %52 = memref.load %arg1[%c1_22, %c2_23] : memref<4x4xf32, #tpu.memory_space<smem>>
    %53 = vector.broadcast %52 : f32 to vector<16x128xf32>
    %54 = arith.mulf %51, %53 : vector<16x128xf32>
    %55 = arith.mulf %54, %54 : vector<16x128xf32>
    %cst_24 = arith.constant 0.100910947 : f32
    %56 = vector.broadcast %cst_24 : f32 to vector<16x128xf32>
    %57 = arith.mulf %56, %55 : vector<16x128xf32>
    %cst_25 = arith.constant 1.12837923 : f32
    %58 = vector.broadcast %cst_25 : f32 to vector<16x128xf32>
    %59 = arith.addf %58, %57 : vector<16x128xf32>
    %60 = arith.mulf %54, %59 : vector<16x128xf32>
    %61 = math.tanh %60 : vector<16x128xf32>
    %c2_26 = arith.constant 2 : index
    %c2_27 = arith.constant 2 : index
    %62 = memref.load %arg1[%c2_26, %c2_27] : memref<4x4xf32, #tpu.memory_space<smem>>
    %63 = vector.broadcast %62 : f32 to vector<16x128xf32>
    %64 = arith.mulf %63, %61 : vector<16x128xf32>
    %c3_28 = arith.constant 3 : index
    %c2_29 = arith.constant 2 : index
    %65 = memref.load %arg1[%c3_28, %c2_29] : memref<4x4xf32, #tpu.memory_space<smem>>
    %cst_30 = arith.constant 0.000000e+00 : f32
    %66 = vector.broadcast %cst_30 : f32 to vector<16x128xf32>
    %67 = arith.subf %66, %55 : vector<16x128xf32>
    %68 = math.exp %67 : vector<16x128xf32>
    %69 = vector.broadcast %65 : f32 to vector<16x128xf32>
    %70 = arith.mulf %69, %68 : vector<16x128xf32>
    %71 = arith.addf %47, %64 : vector<16x128xf32>
    %72 = arith.addf %48, %70 : vector<16x128xf32>
    %c0_31 = arith.constant 0 : index
    %c3_32 = arith.constant 3 : index
    %73 = memref.load %arg1[%c0_31, %c3_32] : memref<4x4xf32, #tpu.memory_space<smem>>
    %74 = vector.broadcast %73 : f32 to vector<16x128xf32>
    %75 = arith.subf %0, %74 : vector<16x128xf32>
    %c1_33 = arith.constant 1 : index
    %c3_34 = arith.constant 3 : index
    %76 = memref.load %arg1[%c1_33, %c3_34] : memref<4x4xf32, #tpu.memory_space<smem>>
    %77 = vector.broadcast %76 : f32 to vector<16x128xf32>
    %78 = arith.mulf %75, %77 : vector<16x128xf32>
    %79 = arith.mulf %78, %78 : vector<16x128xf32>
    %cst_35 = arith.constant 0.100910947 : f32
    %80 = vector.broadcast %cst_35 : f32 to vector<16x128xf32>
    %81 = arith.mulf %80, %79 : vector<16x128xf32>
    %cst_36 = arith.constant 1.12837923 : f32
    %82 = vector.broadcast %cst_36 : f32 to vector<16x128xf32>
    %83 = arith.addf %82, %81 : vector<16x128xf32>
    %84 = arith.mulf %78, %83 : vector<16x128xf32>
    %85 = math.tanh %84 : vector<16x128xf32>
    %c2_37 = arith.constant 2 : index
    %c3_38 = arith.constant 3 : index
    %86 = memref.load %arg1[%c2_37, %c3_38] : memref<4x4xf32, #tpu.memory_space<smem>>
    %87 = vector.broadcast %86 : f32 to vector<16x128xf32>
    %88 = arith.mulf %87, %85 : vector<16x128xf32>
    %c3_39 = arith.constant 3 : index
    %c3_40 = arith.constant 3 : index
    %89 = memref.load %arg1[%c3_39, %c3_40] : memref<4x4xf32, #tpu.memory_space<smem>>
    %cst_41 = arith.constant 0.000000e+00 : f32
    %90 = vector.broadcast %cst_41 : f32 to vector<16x128xf32>
    %91 = arith.subf %90, %79 : vector<16x128xf32>
    %92 = math.exp %91 : vector<16x128xf32>
    %93 = vector.broadcast %89 : f32 to vector<16x128xf32>
    %94 = arith.mulf %93, %92 : vector<16x128xf32>
    %95 = arith.addf %71, %88 : vector<16x128xf32>
    %96 = arith.addf %72, %94 : vector<16x128xf32>
    %c0_42 = arith.constant 0 : index
    %c0_43 = arith.constant 0 : index
    %97 = vector.load %arg3[%c0_42, %c0_43] : memref<16x128xf32, #tpu.memory_space<vmem>>, vector<16x128xf32>
    tpu.vector_store %arg3[%c0_42, %c0_43], %95 {strides = array<i32>} : memref<16x128xf32, #tpu.memory_space<vmem>>, vector<16x128xf32>,
    %98 = math.log %96 : vector<16x128xf32>
    %c0_44 = arith.constant 0 : index
    %c0_45 = arith.constant 0 : index
    %99 = vector.load %arg4[%c0_44, %c0_45] : memref<16x128xf32, #tpu.memory_space<vmem>>, vector<16x128xf32>
    tpu.vector_store %arg4[%c0_44, %c0_45], %98 {strides = array<i32>} : memref<16x128xf32, #tpu.memory_space<vmem>>, vector<16x128xf32>,
    return
  }
  func.func @transform_0(%arg0: i32) -> (i32, i32) {
    %c0_i32 = arith.constant 0 : i32
    %c0_i32_0 = arith.constant 0 : i32
    %c0_i32_1 = arith.constant 0 : i32
    return %c0_i32, %c0_i32_0 : i32, i32
  }
  func.func @transform_1(%arg0: i32) -> (i32, i32) {
    %c0_i32 = arith.constant 0 : i32
    %c0_i32_0 = arith.constant 0 : i32
    return %arg0, %c0_i32 : i32, i32
  }
  func.func @transform_2(%arg0: i32) -> (i32, i32) {
    %c0_i32 = arith.constant 0 : i32
    %c0_i32_0 = arith.constant 0 : i32
    return %arg0, %c0_i32 : i32, i32
  }
  func.func @transform_3(%arg0: i32) -> (i32, i32) {
    %c0_i32 = arith.constant 0 : i32
    %c0_i32_0 = arith.constant 0 : i32
    return %arg0, %c0_i32 : i32, i32
  }
}

</mosaic_0001>

<bundles_post_ra>
// kernel: tpu_custom_call.1
= control target key start
LH: loop header
LB: loop body
LE: loop exit
PB: predicated region body
PF: predicated region fallthrough
CT: control target
= control target key end

     0   :  { %9 = vsyncpa [#allocation5], 0  ;;  %s484_s0 = inlined_call_operand.hbm [shape: f32[4,4], index: 0, kind: input, shape index: {}]   ;;  %s485_s1 = inlined_call_operand.hbm [shape: f32[16,128], index: 1, kind: input, shape index: {}]   ;;  %s486_s2 = inlined_call_operand.hbm [shape: f32[16,128], index: 2, kind: output, shape index: {0}]   ;;  %s487_s3 = inlined_call_operand.hbm [shape: f32[16,128], index: 3, kind: output, shape index: {1}]  }
   0x1   :  { %10 = vsyncpa [#allocation3], 0 }
   0x2   :  { %11 = vsyncpa [#allocation4], 0 }
   0x3   :  { %12 = vsyncpa [#allocation9], 0  ;;  %s283_s14 = scalar_lea.hbm %s484_s0, 64 }
   0x4   :  { %p284_p0 = scmp.ne.s32.totalorder %s484_s0, %s283_s14  ;;  %p287_p1 = scmp.lt.u32.totalorder %s283_s14, %s484_s0 }
   0x6   :  { %p289_p2 = pnand %p287_p1, %p284_p0 }
   0x8   :  { %292 = shalt.err (!%p289_p2)
}
   0x9   :  { %s367_s19 = smov [#allocation2]   ;;  %s368_s22 = smov [#allocation6]  }
   0xa   :  { %20 = dma.hbm_to_smem %s484_s0, 64, %s367_s19, [#allocation5]  }
   0xb   :  { %s26_s23 = sshll.u32 %s368_s22, 4  ;;  %s293_s26 = scalar_lea.hbm %s485_s1, 256  ;;  %s27_s23 = int_to_ptr.vmem [resolvable:$true] %s26_s23 }
   0xc   :  { %p294_p3 = scmp.ne.s32.totalorder %s485_s1, %s293_s26  ;;  %p297_p4 = scmp.lt.u32.totalorder %s293_s26, %s485_s1 }
   0xe   :  { %p299_p5 = pnand %p297_p4, %p294_p3 }
  0x10   :  { %302 = shalt.err (!%p299_p5)
}
  0x11   :  { %s303_s4 = scalar_lea.vmem %s27_s23, 256  ;;  %p308_p7 = scmp.lt.s32.totalorder %s27_s23, %s27_s23 }
  0x12   :  { %p304_p6 = scmp.ne.s32.totalorder %s27_s23, %s303_s4  ;;  %p309_p8 = scmp.lt.s32.totalorder %s303_s4, %s303_s4 }
  0x14   :  { %p310_p9 = por %p309_p8, %p308_p7 }
  0x16   :  { %p311_p10 = pnand %p310_p9, %p304_p6 }
  0x18   :  { %314 = shalt.err (!%p311_p10)
}
  0x19   :  { %s369_s0 = smov 128   ;;  %s370_s5 = smov 8  }
  0x1a   :  { %32 = dma.hbm_to_vmem [thread:$0]  %s485_s1, 256, %s27_s23, [#allocation3], %s369_s0, %s369_s0, %s370_s5  }
  0x1b   :  { %359 = dma.done.wait [#allocation5], 64  }
  0x1c   :  { %360 = vsyncadd [#allocation5], 4294967232 }
  0x1d   :  { %361 = dma.done.wait [#allocation3], 256  }
  0x1e   :  { %362 = vsyncadd [#allocation3], 4294967040 }
  0x1f   :  { %39 = sfence }
  0x20   :  { %s42_s8 = sld [smem:[#allocation2]]  ;;  %s229_s10 = sld [smem:[#allocation2 + $0x1]]  ;;  %v40_v0 = vld [vmem:[#allocation6] sm:$0xff]  ;;  %v41_v1 = vld [vmem:[#allocation6 + $0x8] sm:$0xff] }
  0x21   :  { %s226_s9 = sld [smem:[#allocation2 + $0x80]]  ;;  %s230_s11 = sld [smem:[#allocation2 + $0x81]] }
  0x22   :  { %s233_s12 = sld [smem:[#allocation2 + $0x2]]  ;;  %s237_s14 = sld [smem:[#allocation2 + $0x3]] }
  0x23   :  { %s420_s13 = sld [smem:[#allocation2 + $0x82]]  ;;  %s422_s15 = sld [smem:[#allocation2 + $0x83]] }
  0x24   :  { %s429_s1 = sld [smem:[#allocation2 + $0x100]]  ;;  %s431_s16 = sld [smem:[#allocation2 + $0x101]] }
  0x25   :  { %s433_s17 = sld [smem:[#allocation2 + $0x102]]  ;;  %s435_s18 = sld [smem:[#allocation2 + $0x103]] }
  0x26   :  { %v43_v2 = vstv %s42_s8  ;;  %v77_v5 = vstv %s229_s10  ;;  %s439_s19 = sld [smem:[#allocation2 + $0x180]]  ;;  %s442_s20 = sld [smem:[#allocation2 + $0x181]] }
  0x27   :  { %v47_v3 = vstv %s226_s9  ;;  %v44_v4 = vsub.f32 %v40_v0, %v43_v2  ;;  %v45_v6 = vsub.f32 %v41_v1, %v43_v2  ;;  %v78_v7 = vsub.f32 %v40_v0, %v77_v5  ;;  %s444_s21 = sld [smem:[#allocation2 + $0x182]]  ;;  %s447_s22 = sld [smem:[#allocation2 + $0x183]] }
  0x28   :  { %v81_v8 = vstv %s230_s11  ;;  %v79_v9 = vsub.f32 %v41_v1, %v77_v5  ;;  %v113_v11 = vstv %s233_s12  ;;  %v149_v16 = vstv %s237_s14  ;;  %s371_s23 = smov [#allocation7]  }
  0x29   :  { %v48_v10 = vmul.f32 %v47_v3, %v44_v4  ;;  %v117_v12 = vstv %s420_s13  ;;  %v49_v13 = vmul.f32 %v47_v3, %v45_v6  ;;  %v82_v14 = vmul.f32 %v81_v8, %v78_v7  ;;  %s197_s24 = sshll.u32 %s371_s23, 4  ;;  %s198_s24 = int_to_ptr.vmem [resolvable:$true] %s197_s24 }
  0x2a   :  { %v114_v15 = vsub.f32 %v40_v0, %v113_v11  ;;  %v150_v18 = vsub.f32 %v40_v0, %v149_v16  ;;  %v153_v19 = vstv %s422_s15  ;;  %v83_v23 = vmul.f32 %v81_v8, %v79_v9  ;;  %s315_s25 = scalar_lea.vmem %s198_s24, 256  ;;  %p320_p12 = scmp.lt.s32.totalorder %s198_s24, %s198_s24 }
  0x2b   :  { %v50_v17 = vmul.f32 %v48_v10, %v48_v10  ;;  %v84_v20 = vmul.f32 %v82_v14, %v82_v14  ;;  %v426_v22 = vmul.f32 %v49_v13, %v49_v13  ;;  %v115_v26 = vsub.f32 %v41_v1, %v113_v11  ;;  %p316_p11 = scmp.ne.s32.totalorder %s198_s24, %s315_s25  ;;  %p321_p13 = scmp.lt.s32.totalorder %s315_s25, %s315_s25 }
  0x2c   :  { %v118_v21 = vmul.f32 %v117_v12, %v114_v15  ;;  %v154_v25 = vmul.f32 %v153_v19, %v150_v18  ;;  %v151_v27 = vsub.f32 %v41_v1, %v149_v16  ;;  %v85_v31 = vmul.f32 %v83_v23, %v83_v23 }
  0x2d   :  { %v52_v24 = vmul.f32 0.10091095, %v50_v17  ;;  %v86_v28 = vmul.f32 0.10091095, %v84_v20  ;;  %v53_v30 = vmul.f32 0.10091095, %v426_v22  ;;  %v119_v34 = vmul.f32 %v117_v12, %v115_v26  ;;  %p322_p0 = por %p321_p13, %p320_p12 }
  0x2e   :  { %v120_v29 = vmul.f32 %v118_v21, %v118_v21  ;;  %v156_v33 = vmul.f32 %v154_v25, %v154_v25  ;;  %v155_v35 = vmul.f32 %v153_v19, %v151_v27  ;;  %v87_v41 = vmul.f32 0.10091095, %v85_v31 }
  0x2f   :  { %v54_v32 = vadd.f32 1.1283792, %v52_v24  ;;  %v88_v36 = vadd.f32 1.1283792, %v86_v28  ;;  %v55_v38 = vadd.f32 1.1283792, %v53_v30  ;;  %v121_v42 = vmul.f32 %v119_v34, %v119_v34  ;;  %p323_p1 = pnand %p322_p0, %p316_p11 }
  0x30   :  { %v122_v37 = vmul.f32 0.10091095, %v120_v29  ;;  %v158_v40 = vmul.f32 0.10091095, %v156_v33  ;;  %v157_v46 = vmul.f32 %v155_v35, %v155_v35  ;;  %v89_v48 = vadd.f32 1.1283792, %v87_v41 }
  0x31   :  { %v56_v39 = vmul.f32 %v54_v32, %v48_v10  ;;  %v90_v43 = vmul.f32 %v88_v36, %v82_v14  ;;  %v57_v45 = vmul.f32 %v55_v38, %v49_v13  ;;  %v123_v49 = vmul.f32 0.10091095, %v121_v42 }
  0x32   :  { %v124_v44 = vadd.f32 1.1283792, %v122_v37  ;;  %v160_v47 = vadd.f32 1.1283792, %v158_v40  ;;  %v159_v51 = vmul.f32 0.10091095, %v157_v46  ;;  %v91_v54 = vmul.f32 %v89_v48, %v83_v23 }
  0x33   :  { %247 = vtanh.f32 %v56_v39  ;;  %v65_v52 = vsub.f32 0.0, %v50_v17  ;;  %v125_v55 = vadd.f32 1.1283792, %v123_v49  ;;  %v99_v57 = vsub.f32 0.0, %v84_v20 }
  0x34   :  { %249 = vtanh.f32 %v90_v43  ;;  %v126_v50 = vmul.f32 %v124_v44, %v118_v21  ;;  %v162_v53 = vmul.f32 %v160_v47, %v154_v25  ;;  %v161_v56 = vadd.f32 1.1283792, %v159_v51 }
  0x35   :  { %251 = vtanh.f32 %v57_v45  ;;  %v127_v58 = vmul.f32 %v125_v55, %v119_v34  ;;  %v67_v59 = vmul.f32 1.442695, %v65_v52  ;;  %v135_v60 = vsub.f32 0.0, %v120_v29 }
  0x36   :  { %253 = vtanh.f32 %v126_v50  ;;  %v163_v61 = vmul.f32 %v161_v56, %v155_v35  ;;  %v101_v62 = vmul.f32 1.442695, %v99_v57  ;;  %v171_v0 = vsub.f32 0.0, %v156_v33 }
  0x37   :  { %255 = vtanh.f32 %v162_v53  ;;  %v137_v63 = vmul.f32 1.442695, %v135_v60  ;;  %v66_v1 = vsub.f32 0.0, %v426_v22  ;;  %v100_v2 = vsub.f32 0.0, %v85_v31 }
  0x38   :  { %257 = vtanh.f32 %v91_v54  ;;  %v136_v3 = vsub.f32 0.0, %v121_v42  ;;  %v61_v4 = vstv %s429_s1  ;;  %v173_v5 = vmul.f32 1.442695, %v171_v0 }
  0x39   :  { %259 = vtanh.f32 %v127_v58  ;;  %v172_v6 = vsub.f32 0.0, %v157_v46  ;;  %v95_v7 = vstv %s431_s16  ;;  %v69_v8 = vmul.f32 1.442695, %v66_v1 }
  0x3a   :  { %261 = vtanh.f32 %v163_v61  ;;  %v103_v9 = vmul.f32 1.442695, %v100_v2  ;;  %v139_v11 = vmul.f32 1.442695, %v136_v3  ;;  %v131_v14 = vstv %s433_s17 }
  0x3b   :  { %263 = vpow2.f32 %v67_v59  ;;  %v175_v15 = vmul.f32 1.442695, %v172_v6  ;;  %v167_v18 = vstv %s435_s18  ;;  %v71_v30 = vstv %s439_s19 }
  0x3c   :  { %265 = vpow2.f32 %v101_v62  ;;  %v105_v34 = vstv %s442_s20  ;;  %v141_v38 = vstv %s444_s21  ;;  %v177_v42 = vstv %s447_s22 }
  0x3d   :  { %v248_v10 = vpop.eup %247  ;;  %267 = vpow2.f32 %v137_v63 }
  0x3e   :  { %v250_v12 = vpop.eup %249  ;;  %v62_v13 = vmul.f32 %v248_v10, %v61_v4  ;;  %269 = vpow2.f32 %v173_v5 }
  0x3f   :  { %v252_v16 = vpop.eup %251  ;;  %v96_v17 = vmul.f32 %v250_v12, %v95_v7  ;;  %271 = vpow2.f32 %v69_v8 }
  0x40   :  { %v254_v19 = vpop.eup %253  ;;  %v74_v20 = vadd.f32 0.5, %v62_v13  ;;  %v63_v21 = vmul.f32 %v252_v16, %v61_v4  ;;  %273 = vpow2.f32 %v103_v9 }
  0x41   :  { %v256_v22 = vpop.eup %255  ;;  %v132_v23 = vmul.f32 %v254_v19, %v131_v14  ;;  %275 = vpow2.f32 %v139_v11 }
  0x42   :  { %v258_v24 = vpop.eup %257  ;;  %v108_v25 = vadd.f32 %v96_v17, %v74_v20  ;;  %v168_v26 = vmul.f32 %v256_v22, %v167_v18  ;;  %v75_v27 = vadd.f32 0.5, %v63_v21  ;;  %277 = vpow2.f32 %v175_v15 }
  0x43   :  { %v260_v28 = vpop.eup %259  ;;  %v97_v29 = vmul.f32 %v258_v24, %v95_v7 }
  0x44   :  { %v262_v31 = vpop.eup %261  ;;  %v144_v32 = vadd.f32 %v132_v23, %v108_v25  ;;  %v133_v33 = vmul.f32 %v260_v28, %v131_v14 }
  0x45   :  { %v264_v35 = vpop.eup %263  ;;  %v109_v36 = vadd.f32 %v97_v29, %v75_v27  ;;  %v169_v37 = vmul.f32 %v262_v31, %v167_v18 }
  0x46   :  { %v266_v39 = vpop.eup %265  ;;  %v180_v40 = vadd.f32 %v168_v26, %v144_v32  ;;  %v72_v41 = vmul.f32 %v264_v35, %v71_v30 }
  0x47   :  { %v268_v43 = vpop.eup %267  ;;  %v145_v44 = vadd.f32 %v133_v33, %v109_v36  ;;  %v106_v45 = vmul.f32 %v266_v39, %v105_v34 }
  0x48   :  { %v270_v46 = vpop.eup %269  ;;  %184 = vst [vmem:[#allocation7] sm:$0xff] %v180_v40  ;;  %v142_v47 = vmul.f32 %v268_v43, %v141_v38 }
  0x49   :  { %v272_v48 = vpop.eup %271  ;;  %v181_v49 = vadd.f32 %v169_v37, %v145_v44  ;;  %v110_v50 = vadd.f32 %v106_v45, %v72_v41  ;;  %v178_v51 = vmul.f32 %v270_v46, %v177_v42 }
  0x4a   :  { %v274_v52 = vpop.eup %273  ;;  %v73_v53 = vmul.f32 %v272_v48, %v71_v30 }
  0x4b   :  { %v276_v54 = vpop.eup %275  ;;  %185 = vst [vmem:[#allocation7 + $0x8] sm:$0xff] %v181_v49  ;;  %v146_v55 = vadd.f32 %v142_v47, %v110_v50  ;;  %v107_v56 = vmul.f32 %v274_v52, %v105_v34 }
  0x4c   :  { %v278_v57 = vpop.eup %277  ;;  %v143_v58 = vmul.f32 %v276_v54, %v141_v38 }
  0x4d   :  { %326 = shalt.err (!%p323_p1)
}
  0x4e   :  { %s327_s28 = scalar_lea.hbm %s486_s2, 256 }
  0x4f   :  { %p328_p2 = scmp.ne.s32.totalorder %s486_s2, %s327_s28  ;;  %p331_p3 = scmp.lt.u32.totalorder %s327_s28, %s486_s2 }
  0x51   :  { %p333_p4 = pnand %p331_p3, %p328_p2 }
  0x53   :  { %336 = shalt.err (!%p333_p4)
}
  0x54   :  { %203 = dma.vmem_to_hbm [thread:$0]  %s198_s24, 256, %s486_s2, [#allocation4], %s369_s0, %s369_s0, %s370_s5   ;;  %v182_v59 = vadd.f32 %v178_v51, %v146_v55  ;;  %v111_v60 = vadd.f32 %v107_v56, %v73_v53  ;;  %v179_v61 = vmul.f32 %v278_v57, %v177_v42 }
  0x55   :  { %s372_s9 = smov [#allocation8]  }
  0x56   :  { %279 = vlog2.f32 %v182_v59  ;;  %v147_v62 = vadd.f32 %v143_v58, %v111_v60  ;;  %s209_s10 = sshll.u32 %s372_s9, 4  ;;  %s210_s10 = int_to_ptr.vmem [resolvable:$true] %s209_s10 }
  0x57   :  { %s337_s11 = scalar_lea.vmem %s210_s10, 256  ;;  %p342_p6 = scmp.lt.s32.totalorder %s210_s10, %s210_s10 }
  0x58   :  { %v183_v63 = vadd.f32 %v179_v61, %v147_v62  ;;  %p338_p5 = scmp.ne.s32.totalorder %s210_s10, %s337_s11  ;;  %p343_p7 = scmp.lt.s32.totalorder %s337_s11, %s337_s11 }
  0x5a   :  { %281 = vlog2.f32 %v183_v63  ;;  %p344_p8 = por %p343_p7, %p342_p6 }
  0x5c   :  { %p345_p9 = pnand %p344_p8, %p338_p5 }
  0x60   :  { %v280_v0 = vpop.eup %279 }
  0x61   :  { %v187_v1 = vmul.f32 0.6931472, %v280_v0 }
  0x63   :  { %190 = vst [vmem:[#allocation8] sm:$0xff] %v187_v1 }
  0x64   :  { %v282_v2 = vpop.eup %281 }
  0x65   :  { %v189_v3 = vmul.f32 0.6931472, %v282_v2 }
  0x67   :  { %191 = vst [vmem:[#allocation8 + $0x8] sm:$0xff] %v189_v3 }
  0x68   :  { %348 = shalt.err (!%p345_p9)
}
  0x69   :  { %s349_s13 = scalar_lea.hbm %s487_s3, 256 }
  0x6a   :  { %p350_p10 = scmp.ne.s32.totalorder %s487_s3, %s349_s13  ;;  %p353_p11 = scmp.lt.u32.totalorder %s349_s13, %s487_s3 }
  0x6c   :  { %p355_p12 = pnand %p353_p11, %p350_p10 }
  0x6e   :  { %358 = shalt.err (!%p355_p12)
}
  0x6f   :  { %215 = dma.vmem_to_hbm [thread:$0]  %s210_s10, 256, %s487_s3, [#allocation9], %s369_s0, %s369_s0, %s370_s5  }
  0x70   :  { %363 = dma.done.wait [#allocation4], 256  }
  0x71   :  { %364 = vsyncadd [#allocation4], 4294967040 }
  0x72   :  { %365 = dma.done.wait [#allocation9], 256  }
  0x73   :  { %366 = vsyncadd [#allocation9], 4294967040 }
  0x74   :  { %222 = vsyncpa [#allocation3], 1 }
  0x75   :  { %223 = vsyncpa [#allocation4], 1 }
  0x76   :  { %224 = vsyncpa [#allocation9], 1 }
  0x77   :  { %225 = vsyncpa [#allocation5], 1 }

</bundles_post_ra>
